<compile_context>
chip_gen: v5e
topology: v5e:2x2
jax: 0.10.0
libtpu: 0.0.40
codegen_flags: <defaults>
</compile_context>

<pallas_src>
import functools

import jax
import jax.numpy as jnp
from jax.experimental import pallas as pl
from jax.experimental.pallas import tpu as pltpu


def _loss_kernel(*refs, n_rows, block_rows, blocks_per_part, has_conf):
    if has_conf:
        pred_ref, true_ref, conf_ref, out_ref = refs
    else:
        pred_ref, true_ref, out_ref = refs
        conf_ref = None

    i = pl.program_id(0)   # parallel part
    j = pl.program_id(1)   # sequential step within the part

    @pl.when(j == 0)
    def _():
        out_ref[...] = jnp.zeros_like(out_ref)

    x = pred_ref[...].astype(jnp.float32)          # (blk, Vp)
    t = true_ref[...].astype(jnp.float32)          # (blk, Vp)
    if conf_ref is not None:
        # (blk, Vp), (blk, 1) or (1, Vp) -> broadcasts against (blk, Vp)
        tc = t * conf_ref[...].astype(jnp.float32)
    else:
        tc = t                                     # scalar conf folded outside

    # Numerically stable log-softmax fused into the weighted contribution.
    m = jnp.max(x, axis=-1, keepdims=True)
    lse = m + jnp.log(jnp.sum(jnp.exp(x - m), axis=-1, keepdims=True))
    contrib = (x - lse) * tc                       # == log_softmax(x) * true * conf

    vp = contrib.shape[-1]
    row0 = (i * blocks_per_part + j) * block_rows
    # Partial tail blocks AND clamped out-of-range blocks satisfy this.
    needs_mask = row0 + block_rows > n_rows

    @pl.when(jnp.logical_not(needs_mask))
    def _():
        # Steady-state path: no iota / compare / select.
        out_ref[...] += jnp.sum(contrib.reshape(-1, 8, vp), axis=0)

    @pl.when(needs_mask)
    def _():
        rows = row0 + jax.lax.broadcasted_iota(jnp.int32, (contrib.shape[0], 1), 0)
        masked = jnp.where(rows < n_rows, contrib, 0.0)
        out_ref[...] += jnp.sum(masked.reshape(-1, 8, vp), axis=0)


def _chip_info():
    """Best-effort VMEM capacity + multi-core heuristic (safe fallbacks)."""
    vmem_bytes = 128 << 20
    try:
        info = pltpu.get_tpu_info()
        vmem_bytes = int(getattr(info, "vmem_capacity_bytes", vmem_bytes))
    except Exception:
        pass
    # Generations with <=64 MiB VMEM per TensorCore are the multi-TC chips.
    multi_core = vmem_bytes <= (64 << 20)
    return vmem_bytes, multi_core


def multi_confidence_ae_loss(pred, true, confidence, *,
                             block_rows=None, num_parallel=None,
                             core_parallel=False):
    """pred, true: (..., V); confidence broadcastable to pred. Returns f32 scalar."""
    V = pred.shape[-1]
    pred2 = pred.reshape(-1, V)
    true2 = true.reshape(-1, V)
    N = pred2.shape[0]                              # rows for the mean

    # ---- classify confidence (avoid materializing broadcasts in HBM) -------
    conf = jnp.asarray(confidence)
    scalar_conf = None
    if conf.ndim == 0 or conf.size == 1:
        mode = "none"                               # fold into final scalar
        scalar_conf = conf.astype(jnp.float32).reshape(())
        conf2 = None
    elif conf.shape[-1] == 1:
        mode = "row"                                # thin (N, 1) column
        conf2 = jnp.broadcast_to(conf, pred.shape[:-1] + (1,)).reshape(-1, 1)
    elif conf.shape[-1] == V and conf.size == V:
        mode = "bcast"                              # single resident (1, V) block
        conf2 = conf.reshape(1, V)
    else:
        mode = "full"                               # general case: (N, V)
        conf2 = jnp.broadcast_to(conf, pred.shape).reshape(-1, V)

    # ---- chip-aware defaults ------------------------------------------------
    vmem_cap, multi_core = _chip_info()
    if num_parallel is None:
        num_parallel = 2 if multi_core else 1
    tile_target = (2 << 20) if multi_core else (4 << 20)
    vmem_cap_limit = (32 << 20) if multi_core else (48 << 20)

    itemsize = jnp.dtype(pred2.dtype).itemsize

    # ---- lane padding: V -> multiple of 128 (unmasked vld/vst) --------------
    Vp = ((V + 127) // 128) * 128
    if Vp != V:
        pad_v = Vp - V
        # pred padded with a large negative FINITE value (not 0: corrupts LSE;
        # not -inf: (-inf - lse) * 0 = NaN).  true/conf padded with 0.
        pred2 = jnp.pad(pred2, ((0, 0), (0, pad_v)), constant_values=-1e30)
        true2 = jnp.pad(true2, ((0, 0), (0, pad_v)))
        if mode in ("bcast", "full"):
            conf2 = jnp.pad(conf2, ((0, 0), (0, pad_v)))

    # ---- row padding: N -> multiple of 8 (padded rows masked in-kernel) -----
    pad_r = (-N) % 8
    Np = N + pad_r
    if pad_r:
        pred2 = jnp.pad(pred2, ((0, pad_r), (0, 0)))
        true2 = jnp.pad(true2, ((0, pad_r), (0, 0)))
        if mode in ("row", "full"):
            conf2 = jnp.pad(conf2, ((0, pad_r), (0, 0)))

    # ---- tile size (from actual itemsize), forced to a multiple of 8 --------
    if block_rows is None:
        block_rows = tile_target // (Vp * itemsize)
    block_rows = max(8, (int(block_rows) // 8) * 8)
    block_rows = min(block_rows, Np)

    total_blocks = pl.cdiv(Np, block_rows)
    P = max(1, min(int(num_parallel), total_blocks))
    blocks_per_part = pl.cdiv(total_blocks, P)
    grid = (P, blocks_per_part)

    def row_map(i, j):
        b = i * blocks_per_part + j
        return (jnp.minimum(b, total_blocks - 1), 0)   # clamp; kernel masks

    in_specs = [pl.BlockSpec((block_rows, Vp), row_map),
                pl.BlockSpec((block_rows, Vp), row_map)]
    inputs = [pred2, true2]
    conf_tile_bytes = 0
    if mode == "row":
        in_specs.append(pl.BlockSpec((block_rows, 1), row_map))
        inputs.append(conf2)
        conf_tile_bytes = block_rows * jnp.dtype(conf2.dtype).itemsize
    elif mode == "bcast":
        in_specs.append(pl.BlockSpec((1, Vp), lambda i, j: (0, 0)))
        inputs.append(conf2)
        conf_tile_bytes = Vp * jnp.dtype(conf2.dtype).itemsize
    elif mode == "full":
        in_specs.append(pl.BlockSpec((block_rows, Vp), row_map))
        inputs.append(conf2)
        conf_tile_bytes = block_rows * Vp * jnp.dtype(conf2.dtype).itemsize

    out_spec = pl.BlockSpec((8, Vp), lambda i, j: (i, 0))

    # Double-buffered pred/true(/conf) tiles + accumulator slabs + headroom.
    tile_bytes = block_rows * Vp * itemsize
    need = 2 * (2 * tile_bytes + conf_tile_bytes) + P * 8 * Vp * 4 + (4 << 20)
    vmem_limit = int(min(vmem_cap_limit, max(16 << 20, need)))

    if core_parallel and P > 1:
        # TODO(synk): verify plain "parallel" shards across the 2 TensorCores on
        # v7x; this opt-in forces an explicit per-core split of the leading axis.
        dim_sem = (pltpu.CORE_PARALLEL, pltpu.ARBITRARY)
    else:
        dim_sem = ("parallel", "arbitrary")

    partials = pl.pallas_call(
        functools.partial(_loss_kernel, n_rows=N, block_rows=block_rows,
                          blocks_per_part=blocks_per_part,
                          has_conf=(mode != "none")),
        out_shape=jax.ShapeDtypeStruct((P * 8, Vp), jnp.float32),
        grid_spec=pltpu.PrefetchScalarGridSpec(
            num_scalar_prefetch=0,
            grid=grid,
            in_specs=in_specs,
            out_specs=out_spec,
        ),
        compiler_params=pltpu.CompilerParams(
            dimension_semantics=dim_sem,
            vmem_limit_bytes=vmem_limit,
        ),
    )(*inputs)

    # Final tiny reduce + negate + mean (one XLA reduce over (P*8, Vp)).
    loss = -jnp.sum(partials) / jnp.float32(N)
    if scalar_conf is not None:
        loss = loss * scalar_conf
    return loss


def _reference(pred, true, confidence):
    logp = jax.nn.log_softmax(pred.astype(jnp.float32), axis=-1)
    return -jnp.mean(jnp.sum(logp * true * jnp.asarray(confidence, jnp.float32),
                             axis=-1))


if __name__ == "__main__":
    key = jax.random.PRNGKey(0)
    k1, k2, k3, k4 = jax.random.split(key, 4)

    B, S, V = 2, 8, 128
    pred = jax.random.normal(k1, (B, S, V), dtype=jnp.float32)
    true = jax.nn.softmax(jax.random.normal(k2, (B, S, V), dtype=jnp.float32),
                          axis=-1)

    # 1) Full-shape confidence.
    conf_full = jax.random.uniform(k3, (B, S, V), dtype=jnp.float32)
    loss = jax.block_until_ready(multi_confidence_ae_loss(pred, true, conf_full))
    ref = _reference(pred, true, conf_full)
    assert jnp.allclose(loss, ref, rtol=1e-5, atol=1e-5), (loss, ref)

    # 2) Per-row confidence (thin (N,1) stream, no HBM broadcast).
    conf_row = jax.random.uniform(k3, (B, S, 1), dtype=jnp.float32)
    loss2 = jax.block_until_ready(multi_confidence_ae_loss(pred, true, conf_row))
    ref2 = _reference(pred, true, conf_row)
    assert jnp.allclose(loss2, ref2, rtol=1e-5, atol=1e-5), (loss2, ref2)

    # 3) Scalar confidence (folded into the final scalar; 2 HBM streams only).
    conf_scalar = jnp.float32(0.7)
    loss3 = jax.block_until_ready(multi_confidence_ae_loss(pred, true, conf_scalar))
    ref3 = _reference(pred, true, conf_scalar)
    assert jnp.allclose(loss3, ref3, rtol=1e-5, atol=1e-5), (loss3, ref3)

    # 4) Leading-broadcast per-class confidence, shape (V,) (resident (1,V) block).
    conf_bcast = jax.random.uniform(k4, (V,), dtype=jnp.float32)
    loss4 = jax.block_until_ready(multi_confidence_ae_loss(pred, true, conf_bcast))
    ref4 = _reference(pred, true, conf_bcast)
    assert jnp.allclose(loss4, ref4, rtol=1e-5, atol=1e-5), (loss4, ref4)

    # 5) Ragged shapes: V not a multiple of 128, row count not a multiple of 8
    #    (exercises lane padding with -1e30 and in-kernel row masking).
    Vr, Sr = 96, 13
    pred_r = jax.random.normal(k1, (1, Sr, Vr), dtype=jnp.float32)
    true_r = jax.nn.softmax(jax.random.normal(k2, (1, Sr, Vr), dtype=jnp.float32),
                            axis=-1)
    conf_r = jax.random.uniform(k3, (1, Sr, Vr), dtype=jnp.float32)
    loss5 = jax.block_until_ready(multi_confidence_ae_loss(pred_r, true_r, conf_r))
    ref5 = _reference(pred_r, true_r, conf_r)
    assert jnp.allclose(loss5, ref5, rtol=1e-5, atol=1e-5), (loss5, ref5)

    print("KERNEL_OK")
</pallas_src>

<mosaic_0001>
module attributes {stable_mosaic.version = 11 : i64} {
  func.func @_loss_kernel(%arg0: i32, %arg1: i32, %arg2: memref<16x128xf32, #tpu.memory_space<vmem>>, %arg3: memref<16x128xf32, #tpu.memory_space<vmem>>, %arg4: memref<16x128xf32, #tpu.memory_space<vmem>>, %arg5: memref<8x128xf32, #tpu.memory_space<vmem>>) attributes {dimension_semantics = [#tpu.dimension_semantics<parallel>, #tpu.dimension_semantics<arbitrary>], iteration_bounds = array<i64: 1, 1>, scalar_prefetch = 0 : i64, scratch_operands = 0 : i64, tpu.core_type = #tpu.core_type<tc>, window_params = [{transform_indices = @transform_0, window_bounds = array<i64: 16, 128>}, {transform_indices = @transform_1, window_bounds = array<i64: 16, 128>}, {transform_indices = @transform_2, window_bounds = array<i64: 16, 128>}, {transform_indices = @transform_3, window_bounds = array<i64: 8, 128>}]} {
    %c0_i32 = arith.constant 0 : i32
    %0 = arith.cmpi eq, %arg1, %c0_i32 : i32
    %1 = arith.extui %0 : i1 to i32
    %c0_i32_0 = arith.constant 0 : i32
    %2 = arith.cmpi ne, %1, %c0_i32_0 : i32
    scf.if %2 {
      %cst_11 = arith.constant 0.000000e+00 : f32
      %29 = vector.broadcast %cst_11 : f32 to vector<8x128xf32>
      %c0_12 = arith.constant 0 : index
      %c0_13 = arith.constant 0 : index
      %30 = vector.load %arg5[%c0_12, %c0_13] : memref<8x128xf32, #tpu.memory_space<vmem>>, vector<8x128xf32>
      tpu.vector_store %arg5[%c0_12, %c0_13], %29 {strides = array<i32>} : memref<8x128xf32, #tpu.memory_space<vmem>>, vector<8x128xf32>,
    } else {
    }
    %c0 = arith.constant 0 : index
    %c0_1 = arith.constant 0 : index
    %3 = vector.load %arg2[%c0, %c0_1] : memref<16x128xf32, #tpu.memory_space<vmem>>, vector<16x128xf32>
    %c0_2 = arith.constant 0 : index
    %c0_3 = arith.constant 0 : index
    %4 = vector.load %arg3[%c0_2, %c0_3] : memref<16x128xf32, #tpu.memory_space<vmem>>, vector<16x128xf32>
    %c0_4 = arith.constant 0 : index
    %c0_5 = arith.constant 0 : index
    %5 = vector.load %arg4[%c0_4, %c0_5] : memref<16x128xf32, #tpu.memory_space<vmem>>, vector<16x128xf32>
    %6 = arith.mulf %4, %5 : vector<16x128xf32>
    %cst = arith.constant dense<0xFF800000> : vector<16xf32>
    %7 = vector.multi_reduction <maximumf>, %3, %cst [1] : vector<16x128xf32> to vector<16xf32>
    %8 = vector.shape_cast %7 : vector<16xf32> to vector<16x1xf32>
    %9 = vector.broadcast %8 : vector<16x1xf32> to vector<16x128xf32>
    %10 = arith.subf %3, %9 : vector<16x128xf32>
    %11 = math.exp %10 : vector<16x128xf32>
    %cst_6 = arith.constant dense<0.000000e+00> : vector<16xf32>
    %12 = vector.multi_reduction <add>, %11, %cst_6 [1] : vector<16x128xf32> to vector<16xf32>
    %13 = vector.shape_cast %12 : vector<16xf32> to vector<16x1xf32>
    %14 = math.log %13 : vector<16x1xf32>
    %15 = arith.addf %8, %14 : vector<16x1xf32>
    %16 = vector.broadcast %15 : vector<16x1xf32> to vector<16x128xf32>
    %17 = arith.subf %3, %16 : vector<16x128xf32>
    %18 = arith.mulf %17, %6 : vector<16x128xf32>
    %c1_i32 = arith.constant 1 : i32
    %19 = arith.muli %arg0, %c1_i32 : i32
    %20 = arith.addi %19, %arg1 : i32
    %c16_i32 = arith.constant 16 : i32
    %21 = arith.muli %20, %c16_i32 : i32
    %c16_i32_7 = arith.constant 16 : i32
    %22 = arith.addi %21, %c16_i32_7 : i32
    %c16_i32_8 = arith.constant 16 : i32
    %23 = arith.cmpi sgt, %22, %c16_i32_8 : i32
    %true = arith.constant true
    %24 = arith.xori %23, %true : i1
    %25 = arith.extui %24 : i1 to i32
    %c0_i32_9 = arith.constant 0 : i32
    %26 = arith.cmpi ne, %25, %c0_i32_9 : i32
    scf.if %26 {
      %c0_11 = arith.constant 0 : index
      %c0_12 = arith.constant 0 : index
      %29 = vector.load %arg5[%c0_11, %c0_12] : memref<8x128xf32, #tpu.memory_space<vmem>>, vector<8x128xf32>
      %30 = vector.shape_cast %18 : vector<16x128xf32> to vector<2x8x128xf32>
      %cst_13 = arith.constant dense<0.000000e+00> : vector<8x128xf32>
      %31 = vector.multi_reduction <add>, %30, %cst_13 [0] : vector<2x8x128xf32> to vector<8x128xf32>
      %32 = arith.addf %29, %31 : vector<8x128xf32>
      %c0_14 = arith.constant 0 : index
      %c0_15 = arith.constant 0 : index
      %33 = vector.load %arg5[%c0_14, %c0_15] : memref<8x128xf32, #tpu.memory_space<vmem>>, vector<8x128xf32>
      tpu.vector_store %arg5[%c0_14, %c0_15], %32 {strides = array<i32>} : memref<8x128xf32, #tpu.memory_space<vmem>>, vector<8x128xf32>,
    } else {
    }
    %27 = arith.extui %23 : i1 to i32
    %c0_i32_10 = arith.constant 0 : i32
    %28 = arith.cmpi ne, %27, %c0_i32_10 : i32
    scf.if %28 {
      %29 = tpu.iota {dimensions = array<i32: 0>} : vector<16x1xi32>
      %30 = vector.broadcast %21 : i32 to vector<16x1xi32>
      %31 = arith.addi %30, %29 : vector<16x1xi32>
      %c16_i32_11 = arith.constant 16 : i32
      %32 = vector.broadcast %c16_i32_11 : i32 to vector<16x1xi32>
      %33 = arith.cmpi slt, %31, %32 : vector<16x1xi32>
      %cst_12 = arith.constant 0.000000e+00 : f32
      %34 = vector.shape_cast %33 : vector<16x1xi1> to vector<16x1xi1>
      %35 = vector.broadcast %34 : vector<16x1xi1> to vector<16x128xi1>
      %36 = vector.broadcast %cst_12 : f32 to vector<16x128xf32>
      %37 = arith.select %35, %18, %36 : vector<16x128xi1>, vector<16x128xf32>
      %c0_13 = arith.constant 0 : index
      %c0_14 = arith.constant 0 : index
      %38 = vector.load %arg5[%c0_13, %c0_14] : memref<8x128xf32, #tpu.memory_space<vmem>>, vector<8x128xf32>
      %39 = vector.shape_cast %37 : vector<16x128xf32> to vector<2x8x128xf32>
      %cst_15 = arith.constant dense<0.000000e+00> : vector<8x128xf32>
      %40 = vector.multi_reduction <add>, %39, %cst_15 [0] : vector<2x8x128xf32> to vector<8x128xf32>
      %41 = arith.addf %38, %40 : vector<8x128xf32>
      %c0_16 = arith.constant 0 : index
      %c0_17 = arith.constant 0 : index
      %42 = vector.load %arg5[%c0_16, %c0_17] : memref<8x128xf32, #tpu.memory_space<vmem>>, vector<8x128xf32>
      tpu.vector_store %arg5[%c0_16, %c0_17], %41 {strides = array<i32>} : memref<8x128xf32, #tpu.memory_space<vmem>>, vector<8x128xf32>,
    } else {
    }
    return
  }
  func.func @transform_0(%arg0: i32, %arg1: i32) -> (i32, i32) {
    %c1_i32 = arith.constant 1 : i32
    %0 = arith.muli %arg0, %c1_i32 : i32
    %1 = arith.addi %0, %arg1 : i32
    %c0_i32 = arith.constant 0 : i32
    %2 = arith.minsi %1, %c0_i32 : i32
    %c0_i32_0 = arith.constant 0 : i32
    %c0_i32_1 = arith.constant 0 : i32
    return %2, %c0_i32_0 : i32, i32
  }
  func.func @transform_1(%arg0: i32, %arg1: i32) -> (i32, i32) {
    %c1_i32 = arith.constant 1 : i32
    %0 = arith.muli %arg0, %c1_i32 : i32
    %1 = arith.addi %0, %arg1 : i32
    %c0_i32 = arith.constant 0 : i32
    %2 = arith.minsi %1, %c0_i32 : i32
    %c0_i32_0 = arith.constant 0 : i32
    %c0_i32_1 = arith.constant 0 : i32
    return %2, %c0_i32_0 : i32, i32
  }
  func.func @transform_2(%arg0: i32, %arg1: i32) -> (i32, i32) {
    %c1_i32 = arith.constant 1 : i32
    %0 = arith.muli %arg0, %c1_i32 : i32
    %1 = arith.addi %0, %arg1 : i32
    %c0_i32 = arith.constant 0 : i32
    %2 = arith.minsi %1, %c0_i32 : i32
    %c0_i32_0 = arith.constant 0 : i32
    %c0_i32_1 = arith.constant 0 : i32
    return %2, %c0_i32_0 : i32, i32
  }
  func.func @transform_3(%arg0: i32, %arg1: i32) -> (i32, i32) {
    %c0_i32 = arith.constant 0 : i32
    %c0_i32_0 = arith.constant 0 : i32
    return %arg0, %c0_i32 : i32, i32
  }
}

</mosaic_0001>

<bundles_post_ra>
// kernel: tpu_custom_call.1
= control target key start
LH: loop header
LB: loop body
LE: loop exit
PB: predicated region body
PF: predicated region fallthrough
CT: control target
= control target key end

     0   :  { %8 = vsyncpa [#allocation3], 0  ;;  %s341_s0 = inlined_call_operand.hbm [shape: f32[16,128], index: 0, kind: input, shape index: {}]   ;;  %s342_s1 = inlined_call_operand.hbm [shape: f32[16,128], index: 1, kind: input, shape index: {}]   ;;  %s343_s2 = inlined_call_operand.hbm [shape: f32[16,128], index: 2, kind: input, shape index: {}]   ;;  %s344_s3 = inlined_call_operand.hbm [shape: f32[8,128], index: 3, kind: output, shape index: {}]  }
   0x1   :  { %9 = vsyncpa [#allocation6], 0 }
   0x2   :  { %10 = vsyncpa [#allocation4], 0  ;;  %s40_s14 = sshll.u32 %s342_s1, 4  ;;  %s303_s15 = smov [#allocation5]   ;;  %s41_s14 = int_to_ptr.hbm [resolvable:$true] %s40_s14 }
   0x3   :  { %s42_s16 = sshll.u32 %s303_s15, 4  ;;  %s21_s19 = sshll.u32 %s341_s0, 4  ;;  %s43_s16 = int_to_ptr.vmem [resolvable:$true] %s42_s16  ;;  %s22_s19 = int_to_ptr.hbm [resolvable:$true] %s21_s19 }
   0x4   :  { %s304_s20 = smov 128   ;;  %s305_s21 = smov 8  }
   0x5   :  { %48 = dma.hbm_to_vmem [thread:$0]  %s41_s14, 256, %s43_s16, [#allocation6], %s304_s20, %s304_s20, %s305_s21  }
   0x6   :  { %s306_s22 = smov [#allocation2]   ;;  %s59_s26 = sshll.u32 %s343_s2, 4  ;;  %s60_s26 = int_to_ptr.hbm [resolvable:$true] %s59_s26 }
   0x7   :  { %s23_s23 = sshll.u32 %s306_s22, 4  ;;  %s307_s1 = smov [#allocation7]   ;;  %s24_s23 = int_to_ptr.vmem [resolvable:$true] %s23_s23 }
   0x8   :  { %29 = dma.hbm_to_vmem [thread:$0]  %s22_s19, 256, %s24_s23, [#allocation3], %s304_s20, %s304_s20, %s305_s21  }
   0x9   :  { %s61_s27 = sshll.u32 %s307_s1, 4  ;;  %s62_s27 = int_to_ptr.vmem [resolvable:$true] %s61_s27 }
   0xa   :  { %67 = dma.hbm_to_vmem [thread:$0]  %s60_s26, 256, %s62_s27, [#allocation6], %s304_s20, %s304_s20, %s305_s21  }
   0xb   :  { %297 = dma.done.wait [#allocation3], 256  }
   0xc   :  { %298 = vsyncadd [#allocation3], 4294967040 }
   0xd   :  { %299 = dma.done.wait [#allocation6], 512  }
   0xe   :  { %300 = vsyncadd [#allocation6], 4294966784  ;;  %v97_v0 = vld [vmem:[#allocation2] sm:$0xff]  ;;  %v98_v1 = vld [vmem:[#allocation2 + $0x8] sm:$0xff]  ;;  %s308_s0 = smov [#allocation8]   ;;  %s169_s30 = sshll.u32 %s344_s3, 4  ;;  %s170_s30 = int_to_ptr.hbm [resolvable:$true] %s169_s30 }
   0xf   :  { %105 = vmax.xlane.f32.xlu0 %v97_v0  ;;  %v99_v14 = vld [vmem:[#allocation5] sm:$0xff]  ;;  %v101_v17 = vld [vmem:[#allocation7] sm:$0xff]  ;;  %v100_v18 = vld [vmem:[#allocation5 + $0x8] sm:$0xff]  ;;  %s167_s2 = sshll.u32 %s308_s0, 4  ;;  %s168_s2 = int_to_ptr.vmem [resolvable:$true] %s167_s2 }
  0x10   :  { %v102_v19 = vld [vmem:[#allocation7 + $0x8] sm:$0xff]  ;;  %v103_v21 = vmul.f32 %v101_v17, %v99_v14 }
  0x11   :  { %v104_v23 = vmul.f32 %v102_v19, %v100_v18 }
  0x17   :  { %107 = vmax.xlane.f32.xlu0 %v98_v1 }
  0x82   :  { %v106_v2 = vpop.xlane.xlu0 %105 }
  0x83   :  { %v109_v3 = vsub.f32 %v97_v0, %v106_v2 }
  0x85   :  { %v111_v4 = vmul.f32 1.442695, %v109_v3 }
  0x87   :  { %193 = vpow2.f32 %v111_v4 }
  0x8a   :  { %v108_v5 = vpop.xlane.xlu0 %107 }
  0x8b   :  { %v110_v6 = vsub.f32 %v98_v1, %v108_v5 }
  0x8d   :  { %v194_v7 = vpop.eup %193  ;;  %v113_v8 = vmul.f32 1.442695, %v110_v6 }
  0x8e   :  { %115 = vadd.xlane.f32.xlu1 %v194_v7 }
  0x8f   :  { %195 = vpow2.f32 %v113_v8 }
  0x95   :  { %v196_v9 = vpop.eup %195 }
  0x96   :  { %117 = vadd.xlane.f32.xlu1 %v196_v9 }
 0x101   :  { %v116_v10 = vpop.xlane.xlu1 %115 }
 0x102   :  { %197 = vlog2.f32 %v116_v10 }
 0x108   :  { %v198_v11 = vpop.eup %197 }
 0x109   :  { %v118_v12 = vpop.xlane.xlu1 %117  ;;  %v120_v13 = vmul.f32 0.6931472, %v198_v11 }
 0x10a   :  { %199 = vlog2.f32 %v118_v12 }
 0x10b   :  { %v123_v15 = vadd.f32 %v120_v13, %v106_v2 }
 0x10d   :  { %v125_v22 = vsub.f32 %v97_v0, %v123_v15 }
 0x10f   :  { %v127_v26 = vmul.f32 %v125_v22, %v103_v21 }
 0x110   :  { %v200_v16 = vpop.eup %199 }
 0x111   :  { %v122_v20 = vmul.f32 0.6931472, %v200_v16 }
 0x113   :  { %v124_v24 = vadd.f32 %v122_v20, %v108_v5 }
 0x115   :  { %v126_v25 = vsub.f32 %v98_v1, %v124_v24 }
 0x117   :  { %v128_v27 = vmul.f32 %v126_v25, %v104_v23 }
 0x119   :  { %v138_v28 = vadd.f32 %v128_v27, %v127_v26 }
 0x11b   :  { %140 = vst [vmem:[#allocation8] sm:$0xff] %v138_v28 }
 0x11c   :  { %172 = dma.vmem_to_hbm [thread:$0]  %s168_s2, 128, %s170_s30, [#allocation4]  }
 0x11d   :  { %301 = dma.done.wait [#allocation4], 128  }
 0x11e   :  { %302 = vsyncadd [#allocation4], 4294967168 }
 0x11f   :  { %177 = vsyncpa [#allocation3], 1 }
 0x120   :  { %178 = vsyncpa [#allocation6], 1 }
 0x121   :  { %179 = vsyncpa [#allocation4], 1 }

</bundles_post_ra>
